<compile_context>
chip_gen: v6e
topology: v6e:2x2x1
jax: 0.10.0
libtpu: 0.0.40
codegen_flags: <defaults>
</compile_context>

<pallas_src>
import jax
import jax.numpy as jnp
from jax.experimental import pallas as pl
from jax.experimental.pallas import tpu as pltpu

LANE = 128


def _round_up(x, m):
    return ((x + m - 1) // m) * m


def _cdiv(a, b):
    return -(-a // b)


def mlp_kernel(x_ref, w1_ref, b1_ref, w2_ref, b2_ref,
               w3_ref, b3_ref, w4_ref, b4_ref, o_ref):
    # One batch tile per grid step: 4 MXU matmuls + VPU bias-add/ReLU, fully
    # fused.  x arrives unpadded (K = n_in for the first matmul); hidden
    # activations are lane-padded to 128; the final store is narrow (n_out).
    h = x_ref[...]

    h = jnp.maximum(
        jnp.dot(h, w1_ref[...], preferred_element_type=jnp.float32) + b1_ref[...], 0.0)
    h = jnp.maximum(
        jnp.dot(h, w2_ref[...], preferred_element_type=jnp.float32) + b2_ref[...], 0.0)
    h = jnp.maximum(
        jnp.dot(h, w3_ref[...], preferred_element_type=jnp.float32) + b3_ref[...], 0.0)
    h = jnp.maximum(
        jnp.dot(h, w4_ref[...], preferred_element_type=jnp.float32) + b4_ref[...], 0.0)

    # Store only the meaningful output columns (padded w4/b4 columns are
    # exactly zero -> relu(0) = 0, so nothing of value is dropped).
    o_ref[...] = h[:, :o_ref.shape[1]].astype(o_ref.dtype)


def net_forward(x, params, *, block_b=2048):
    """x: (B, nInput) float32. params: dict w1..w4 (in,out), b1..b4 (1,out)."""
    B, n_in = x.shape
    hid = params["w1"].shape[1]     # 64
    n_out = params["w4"].shape[1]   # 10

    hid_p = _round_up(hid, LANE)    # 128
    out_p = _round_up(n_out, LANE)  # 128

    # Balanced batch tiling: choose the number of steps from the desired tile
    # size, then re-derive tb so every step carries (almost) the same number
    # of real rows -- avoids a mostly-padding last tile at unlucky B.
    b8 = _round_up(B, 8)
    steps = _cdiv(b8, min(block_b, b8))
    tb = _round_up(_cdiv(b8, steps), 8)
    b_pad = tb * steps

    # Only batch-pad x (and only if needed); feature dim stays unpadded.
    x_p = x if b_pad == B else jnp.pad(x, ((0, b_pad - B), (0, 0)))

    # Weights / biases: pad hidden + output feature dims to 128 lanes with
    # zeros (one-time, tiny).  w1 keeps its n_in rows (8-aligned for n_in=32).
    w1 = jnp.pad(params["w1"], ((0, 0), (0, hid_p - hid)))
    b1 = jnp.pad(params["b1"], ((0, 0), (0, hid_p - hid)))
    w2 = jnp.pad(params["w2"], ((0, hid_p - hid), (0, hid_p - hid)))
    b2 = jnp.pad(params["b2"], ((0, 0), (0, hid_p - hid)))
    w3 = jnp.pad(params["w3"], ((0, hid_p - hid), (0, hid_p - hid)))
    b3 = jnp.pad(params["b3"], ((0, 0), (0, hid_p - hid)))
    w4 = jnp.pad(params["w4"], ((0, hid_p - hid), (0, out_p - n_out)))
    b4 = jnp.pad(params["b4"], ((0, 0), (0, out_p - n_out)))

    grid = (steps,)

    out = pl.pallas_call(
        mlp_kernel,
        out_shape=jax.ShapeDtypeStruct((b_pad, n_out), jnp.float32),
        grid_spec=pltpu.PrefetchScalarGridSpec(
            num_scalar_prefetch=0,
            grid=grid,
            in_specs=[
                # x: tiled over batch, UNPADDED last dim (== full array dim).
                pl.BlockSpec((tb, n_in), lambda i: (i, 0)),
                # weights / biases: small, full blocks, same tile every step.
                pl.BlockSpec((n_in, hid_p), lambda i: (0, 0)),
                pl.BlockSpec((1, hid_p), lambda i: (0, 0)),
                pl.BlockSpec((hid_p, hid_p), lambda i: (0, 0)),
                pl.BlockSpec((1, hid_p), lambda i: (0, 0)),
                pl.BlockSpec((hid_p, hid_p), lambda i: (0, 0)),
                pl.BlockSpec((1, hid_p), lambda i: (0, 0)),
                pl.BlockSpec((hid_p, out_p), lambda i: (0, 0)),
                pl.BlockSpec((1, out_p), lambda i: (0, 0)),
            ],
            # Narrow output: last dim == full array dim (n_out), so the
            # writeback moves only n_out*4 B/row.
            out_specs=pl.BlockSpec((tb, n_out), lambda i: (i, 0)),
        ),
        compiler_params=pltpu.CompilerParams(
            dimension_semantics=("parallel",)),
    )(x_p, w1, b1, w2, b2, w3, b3, w4, b4)

    # Strip batch padding (if any) outside the kernel; no lane slice needed.
    return out if b_pad == B else out[:B]


def init_params(key, n_input):
    """Deterministic init mimicking PyTorch nn.Linear default
    (U[-1/sqrt(fan_in), +1/sqrt(fan_in)])."""
    sizes = [(n_input, 64), (64, 64), (64, 64), (64, 10)]
    params = {}
    for i, (fan_in, fan_out) in enumerate(sizes, start=1):
        key, kw, kb = jax.random.split(key, 3)
        bound = 1.0 / (fan_in ** 0.5)
        params[f"w{i}"] = jax.random.uniform(
            kw, (fan_in, fan_out), jnp.float32, minval=-bound, maxval=bound)
        params[f"b{i}"] = jax.random.uniform(
            kb, (1, fan_out), jnp.float32, minval=-bound, maxval=bound)
    return params


def reference_forward(x, params):
    h = x
    for i in range(1, 5):
        h = jnp.maximum(h @ params[f"w{i}"] + params[f"b{i}"], 0.0)
    return h


if __name__ == "__main__":
    key = jax.random.PRNGKey(0)
    n_input = 32
    batch = 8

    key, kx, kp = jax.random.split(key, 3)
    x = jax.random.normal(kx, (batch, n_input), jnp.float32)
    params = init_params(kp, n_input)

    out = net_forward(x, params)
    out = jax.block_until_ready(out)

    ref = reference_forward(x, params)
    assert out.shape == (batch, 10), f"bad shape {out.shape}"
    assert jnp.allclose(out, ref, atol=1e-5, rtol=1e-5), "mismatch vs reference"

    print("KERNEL_OK")
</pallas_src>

<mosaic_0001>
module attributes {stable_mosaic.version = 11 : i64} {
  func.func @mlp_kernel(%arg0: i32, %arg1: memref<8x32xf32, #tpu.memory_space<vmem>>, %arg2: memref<32x128xf32, #tpu.memory_space<vmem>>, %arg3: memref<1x128xf32, #tpu.memory_space<vmem>>, %arg4: memref<128x128xf32, #tpu.memory_space<vmem>>, %arg5: memref<1x128xf32, #tpu.memory_space<vmem>>, %arg6: memref<128x128xf32, #tpu.memory_space<vmem>>, %arg7: memref<1x128xf32, #tpu.memory_space<vmem>>, %arg8: memref<128x128xf32, #tpu.memory_space<vmem>>, %arg9: memref<1x128xf32, #tpu.memory_space<vmem>>, %arg10: memref<8x10xf32, #tpu.memory_space<vmem>>) attributes {dimension_semantics = [#tpu.dimension_semantics<parallel>], iteration_bounds = array<i64: 1>, scalar_prefetch = 0 : i64, scratch_operands = 0 : i64, tpu.core_type = #tpu.core_type<tc>, window_params = [{transform_indices = @transform_0, window_bounds = array<i64: 8, 32>}, {pipeline_mode = #tpu.pipeline_mode<synchronous>, transform_indices = @transform_1, window_bounds = array<i64: 32, 128>}, {pipeline_mode = #tpu.pipeline_mode<synchronous>, transform_indices = @transform_2, window_bounds = array<i64: 1, 128>}, {pipeline_mode = #tpu.pipeline_mode<synchronous>, transform_indices = @transform_3, window_bounds = array<i64: 128, 128>}, {pipeline_mode = #tpu.pipeline_mode<synchronous>, transform_indices = @transform_4, window_bounds = array<i64: 1, 128>}, {pipeline_mode = #tpu.pipeline_mode<synchronous>, transform_indices = @transform_5, window_bounds = array<i64: 128, 128>}, {pipeline_mode = #tpu.pipeline_mode<synchronous>, transform_indices = @transform_6, window_bounds = array<i64: 1, 128>}, {pipeline_mode = #tpu.pipeline_mode<synchronous>, transform_indices = @transform_7, window_bounds = array<i64: 128, 128>}, {pipeline_mode = #tpu.pipeline_mode<synchronous>, transform_indices = @transform_8, window_bounds = array<i64: 1, 128>}, {transform_indices = @transform_9, window_bounds = array<i64: 8, 10>}]} {
    %c0 = arith.constant 0 : index
    %c0_0 = arith.constant 0 : index
    %0 = vector.load %arg1[%c0, %c0_0] : memref<8x32xf32, #tpu.memory_space<vmem>>, vector<8x32xf32>
    %c0_1 = arith.constant 0 : index
    %c0_2 = arith.constant 0 : index
    %1 = vector.load %arg2[%c0_1, %c0_2] : memref<32x128xf32, #tpu.memory_space<vmem>>, vector<32x128xf32>
    %cst = arith.constant dense<0.000000e+00> : vector<8x128xf32>
    %2 = tpu.matmul %0, %1, %cst {dimension_numbers = #tpu.dot_dimension_numbers<[1], [0], [0], [1], [0, 0, 1, 1], [], []>} : vector<8x32xf32>, vector<32x128xf32>, vector<8x128xf32> -> vector<8x128xf32>
    %c0_3 = arith.constant 0 : index
    %c0_4 = arith.constant 0 : index
    %3 = vector.load %arg3[%c0_3, %c0_4] : memref<1x128xf32, #tpu.memory_space<vmem>>, vector<1x128xf32>
    %4 = vector.broadcast %3 : vector<1x128xf32> to vector<8x128xf32>
    %5 = arith.addf %2, %4 : vector<8x128xf32>
    %cst_5 = arith.constant 0.000000e+00 : f32
    %6 = vector.broadcast %cst_5 : f32 to vector<8x128xf32>
    %7 = arith.maximumf %5, %6 : vector<8x128xf32>
    %c0_6 = arith.constant 0 : index
    %c0_7 = arith.constant 0 : index
    %8 = vector.load %arg4[%c0_6, %c0_7] : memref<128x128xf32, #tpu.memory_space<vmem>>, vector<128x128xf32>
    %cst_8 = arith.constant dense<0.000000e+00> : vector<8x128xf32>
    %9 = tpu.matmul %7, %8, %cst_8 {dimension_numbers = #tpu.dot_dimension_numbers<[1], [0], [0], [1], [0, 0, 1, 1], [], []>} : vector<8x128xf32>, vector<128x128xf32>, vector<8x128xf32> -> vector<8x128xf32>
    %c0_9 = arith.constant 0 : index
    %c0_10 = arith.constant 0 : index
    %10 = vector.load %arg5[%c0_9, %c0_10] : memref<1x128xf32, #tpu.memory_space<vmem>>, vector<1x128xf32>
    %11 = vector.broadcast %10 : vector<1x128xf32> to vector<8x128xf32>
    %12 = arith.addf %9, %11 : vector<8x128xf32>
    %cst_11 = arith.constant 0.000000e+00 : f32
    %13 = vector.broadcast %cst_11 : f32 to vector<8x128xf32>
    %14 = arith.maximumf %12, %13 : vector<8x128xf32>
    %c0_12 = arith.constant 0 : index
    %c0_13 = arith.constant 0 : index
    %15 = vector.load %arg6[%c0_12, %c0_13] : memref<128x128xf32, #tpu.memory_space<vmem>>, vector<128x128xf32>
    %cst_14 = arith.constant dense<0.000000e+00> : vector<8x128xf32>
    %16 = tpu.matmul %14, %15, %cst_14 {dimension_numbers = #tpu.dot_dimension_numbers<[1], [0], [0], [1], [0, 0, 1, 1], [], []>} : vector<8x128xf32>, vector<128x128xf32>, vector<8x128xf32> -> vector<8x128xf32>
    %c0_15 = arith.constant 0 : index
    %c0_16 = arith.constant 0 : index
    %17 = vector.load %arg7[%c0_15, %c0_16] : memref<1x128xf32, #tpu.memory_space<vmem>>, vector<1x128xf32>
    %18 = vector.broadcast %17 : vector<1x128xf32> to vector<8x128xf32>
    %19 = arith.addf %16, %18 : vector<8x128xf32>
    %cst_17 = arith.constant 0.000000e+00 : f32
    %20 = vector.broadcast %cst_17 : f32 to vector<8x128xf32>
    %21 = arith.maximumf %19, %20 : vector<8x128xf32>
    %c0_18 = arith.constant 0 : index
    %c0_19 = arith.constant 0 : index
    %22 = vector.load %arg8[%c0_18, %c0_19] : memref<128x128xf32, #tpu.memory_space<vmem>>, vector<128x128xf32>
    %cst_20 = arith.constant dense<0.000000e+00> : vector<8x128xf32>
    %23 = tpu.matmul %21, %22, %cst_20 {dimension_numbers = #tpu.dot_dimension_numbers<[1], [0], [0], [1], [0, 0, 1, 1], [], []>} : vector<8x128xf32>, vector<128x128xf32>, vector<8x128xf32> -> vector<8x128xf32>
    %c0_21 = arith.constant 0 : index
    %c0_22 = arith.constant 0 : index
    %24 = vector.load %arg9[%c0_21, %c0_22] : memref<1x128xf32, #tpu.memory_space<vmem>>, vector<1x128xf32>
    %25 = vector.broadcast %24 : vector<1x128xf32> to vector<8x128xf32>
    %26 = arith.addf %23, %25 : vector<8x128xf32>
    %cst_23 = arith.constant 0.000000e+00 : f32
    %27 = vector.broadcast %cst_23 : f32 to vector<8x128xf32>
    %28 = arith.maximumf %26, %27 : vector<8x128xf32>
    %29 = vector.extract_strided_slice %28 {offsets = [0, 0], sizes = [8, 10], strides = [1, 1]} : vector<8x128xf32> to vector<8x10xf32>
    %c0_24 = arith.constant 0 : index
    %c0_25 = arith.constant 0 : index
    %30 = vector.load %arg10[%c0_24, %c0_25] : memref<8x10xf32, #tpu.memory_space<vmem>>, vector<8x10xf32>
    tpu.vector_store %arg10[%c0_24, %c0_25], %29 {strides = array<i32>} : memref<8x10xf32, #tpu.memory_space<vmem>>, vector<8x10xf32>,
    return
  }
  func.func @transform_0(%arg0: i32) -> (i32, i32) {
    %c0_i32 = arith.constant 0 : i32
    %c0_i32_0 = arith.constant 0 : i32
    return %arg0, %c0_i32 : i32, i32
  }
  func.func @transform_1(%arg0: i32) -> (i32, i32) {
    %c0_i32 = arith.constant 0 : i32
    %c0_i32_0 = arith.constant 0 : i32
    %c0_i32_1 = arith.constant 0 : i32
    return %c0_i32, %c0_i32_0 : i32, i32
  }
  func.func @transform_2(%arg0: i32) -> (i32, i32) {
    %c0_i32 = arith.constant 0 : i32
    %c0_i32_0 = arith.constant 0 : i32
    %c0_i32_1 = arith.constant 0 : i32
    return %c0_i32, %c0_i32_0 : i32, i32
  }
  func.func @transform_3(%arg0: i32) -> (i32, i32) {
    %c0_i32 = arith.constant 0 : i32
    %c0_i32_0 = arith.constant 0 : i32
    %c0_i32_1 = arith.constant 0 : i32
    return %c0_i32, %c0_i32_0 : i32, i32
  }
  func.func @transform_4(%arg0: i32) -> (i32, i32) {
    %c0_i32 = arith.constant 0 : i32
    %c0_i32_0 = arith.constant 0 : i32
    %c0_i32_1 = arith.constant 0 : i32
    return %c0_i32, %c0_i32_0 : i32, i32
  }
  func.func @transform_5(%arg0: i32) -> (i32, i32) {
    %c0_i32 = arith.constant 0 : i32
    %c0_i32_0 = arith.constant 0 : i32
    %c0_i32_1 = arith.constant 0 : i32
    return %c0_i32, %c0_i32_0 : i32, i32
  }
  func.func @transform_6(%arg0: i32) -> (i32, i32) {
    %c0_i32 = arith.constant 0 : i32
    %c0_i32_0 = arith.constant 0 : i32
    %c0_i32_1 = arith.constant 0 : i32
    return %c0_i32, %c0_i32_0 : i32, i32
  }
  func.func @transform_7(%arg0: i32) -> (i32, i32) {
    %c0_i32 = arith.constant 0 : i32
    %c0_i32_0 = arith.constant 0 : i32
    %c0_i32_1 = arith.constant 0 : i32
    return %c0_i32, %c0_i32_0 : i32, i32
  }
  func.func @transform_8(%arg0: i32) -> (i32, i32) {
    %c0_i32 = arith.constant 0 : i32
    %c0_i32_0 = arith.constant 0 : i32
    %c0_i32_1 = arith.constant 0 : i32
    return %c0_i32, %c0_i32_0 : i32, i32
  }
  func.func @transform_9(%arg0: i32) -> (i32, i32) {
    %c0_i32 = arith.constant 0 : i32
    %c0_i32_0 = arith.constant 0 : i32
    return %arg0, %c0_i32 : i32, i32
  }
}

</mosaic_0001>

<bundles_post_ra>
// kernel: tpu_custom_call.1
= control target key start
LH: loop header
LB: loop body
LE: loop exit
PB: predicated region body
PF: predicated region fallthrough
CT: control target
= control target key end

     0   :  { %14 = vsyncpa [#allocation3], 0  ;;  %s964_s0 = inlined_call_operand.hbm [shape: f32[8,32], index: 0, kind: input, shape index: {}]   ;;  %s965_s1 = inlined_call_operand.hbm [shape: f32[32,128], index: 1, kind: input, shape index: {}]   ;;  %s966_s2 = inlined_call_operand.vmem [shape: f32[1,128], index: 2, kind: input, shape index: {}]   ;;  %s967_s3 = inlined_call_operand.hbm [shape: f32[128,128], index: 3, kind: input, shape index: {}]   ;;  %s968_s4 = inlined_call_operand.vmem [shape: f32[1,128], index: 4, kind: input, shape index: {}]   ;;  %s969_s5 = inlined_call_operand.hbm [shape: f32[128,128], index: 5, kind: input, shape index: {}]   ;;  %s970_s6 = inlined_call_operand.vmem [shape: f32[1,128], index: 6, kind: input, shape index: {}]   ;;  %s971_s7 = inlined_call_operand.hbm [shape: f32[128,128], index: 7, kind: input, shape index: {}]   ;;  %s972_s8 = inlined_call_operand.vmem [shape: f32[1,128], index: 8, kind: input, shape index: {}]   ;;  %s973_s9 = inlined_call_operand.hbm [shape: f32[8,10], index: 9, kind: output, shape index: {}]  }
   0x1   :  { %15 = vsyncpa [#allocation6], 0 }
   0x2   :  { %16 = vsyncpa [#allocation9], 0 }
   0x3   :  { %17 = vsyncpa [#allocation4], 0  ;;  %s802_s30 = smov [#allocation5]  }
   0x4   :  { %s33_s10 = sshll.u32 %s802_s30, 4  ;;  %s34_s10 = int_to_ptr.vmem [resolvable:$true] %s33_s10 }
   0x5   :  { %s682_s11 = scalar_lea.vmem %s34_s10, 512  ;;  %p687_p1 = scmp.lt.s32.totalorder %s34_s10, %s34_s10 }
   0x6   :  { %p683_p0 = scmp.ne.s32.totalorder %s34_s10, %s682_s11  ;;  %p688_p2 = scmp.lt.s32.totalorder %s682_s11, %s682_s11 }
   0x8   :  { %p689_p3 = por %p688_p2, %p687_p1 }
   0xa   :  { %p690_p4 = pnand %p689_p3, %p683_p0 }
   0xc   :  { %693 = shalt.err (!%p690_p4)
}
   0xd   :  { %s803_s12 = smov 128   ;;  %s804_s13 = smov 8  }
   0xe   :  { %39 = dma.hbm_to_vmem [thread:$0]  %s965_s1, 512, %s34_s10, [#allocation6], %s803_s12, %s803_s12, %s804_s13  }
   0xf   :  { %s805_s16 = smov [#allocation8]   ;;  %s806_s18 = smov [#allocation2]  }
  0x10   :  { %s61_s17 = sshll.u32 %s805_s16, 4  ;;  %s24_s19 = sshll.u32 %s806_s18, 4  ;;  %s62_s17 = int_to_ptr.vmem [resolvable:$true] %s61_s17  ;;  %s25_s19 = int_to_ptr.vmem [resolvable:$true] %s24_s19 }
  0x11   :  { %s702_s20 = scalar_lea.vmem %s62_s17, 2048  ;;  %p707_p6 = scmp.lt.s32.totalorder %s62_s17, %s62_s17 }
  0x12   :  { %p703_p5 = scmp.ne.s32.totalorder %s62_s17, %s702_s20  ;;  %p708_p7 = scmp.lt.s32.totalorder %s702_s20, %s702_s20 }
  0x14   :  { %p709_p8 = por %p708_p7, %p707_p6 }
  0x16   :  { %p710_p9 = pnand %p709_p8, %p703_p5 }
  0x18   :  { %713 = shalt.err (!%p710_p9)
}
  0x19   :  { %67 = dma.hbm_to_vmem [thread:$0]  %s969_s5, 2048, %s62_s17, [#allocation9], %s803_s12, %s803_s12, %s804_s13  }
  0x1a   :  { %s722_s1 = scalar_lea.vmem %s25_s19, 128  ;;  %p727_p11 = scmp.lt.s32.totalorder %s25_s19, %s25_s19 }
  0x1b   :  { %p723_p10 = scmp.ne.s32.totalorder %s25_s19, %s722_s1  ;;  %p728_p12 = scmp.lt.s32.totalorder %s722_s1, %s722_s1 }
  0x1d   :  { %p729_p13 = por %p728_p12, %p727_p11 }
  0x1f   :  { %p730_p0 = pnand %p729_p13, %p723_p10 }
  0x21   :  { %733 = shalt.err (!%p730_p0)
}
  0x22   :  { %27 = dma.hbm_to_vmem [thread:$0]  %s964_s0, 128, %s25_s19, [#allocation3]  }
  0x23   :  { %s807_s25 = smov [#allocation7]   ;;  %s808_s27 = smov [#allocation10]  }
  0x24   :  { %s47_s26 = sshll.u32 %s807_s25, 4  ;;  %s75_s28 = sshll.u32 %s808_s27, 4  ;;  %s48_s26 = int_to_ptr.vmem [resolvable:$true] %s47_s26  ;;  %s76_s28 = int_to_ptr.vmem [resolvable:$true] %s75_s28 }
  0x25   :  { %s742_s29 = scalar_lea.vmem %s48_s26, 2048  ;;  %p747_p2 = scmp.lt.s32.totalorder %s48_s26, %s48_s26 }
  0x26   :  { %p743_p1 = scmp.ne.s32.totalorder %s48_s26, %s742_s29  ;;  %p748_p3 = scmp.lt.s32.totalorder %s742_s29, %s742_s29 }
  0x28   :  { %p749_p4 = por %p748_p3, %p747_p2 }
  0x2a   :  { %p750_p5 = pnand %p749_p4, %p743_p1 }
  0x2c   :  { %753 = shalt.err (!%p750_p5)
}
  0x2d   :  { %53 = dma.hbm_to_vmem [thread:$0]  %s967_s3, 2048, %s48_s26, [#allocation6], %s803_s12, %s803_s12, %s804_s13  }
  0x2e   :  { %s762_s0 = scalar_lea.vmem %s76_s28, 2048  ;;  %p767_p7 = scmp.lt.s32.totalorder %s76_s28, %s76_s28 }
  0x2f   :  { %p763_p6 = scmp.ne.s32.totalorder %s76_s28, %s762_s0  ;;  %p768_p8 = scmp.lt.s32.totalorder %s762_s0, %s762_s0 }
  0x31   :  { %p769_p9 = por %p768_p8, %p767_p7 }
  0x33   :  { %p770_p10 = pnand %p769_p9, %p763_p6 }
  0x35   :  { %773 = shalt.err (!%p770_p10)
}
  0x36   :  { %81 = dma.hbm_to_vmem [thread:$0]  %s971_s7, 2048, %s76_s28, [#allocation9], %s803_s12, %s803_s12, %s804_s13  }
  0x37   :  { %794 = dma.done.wait [#allocation3], 128  }
  0x38   :  { %795 = vsyncadd [#allocation3], 4294967168 }
  0x39   :  { %796 = dma.done.wait [#allocation6], 2560  }
  0x3a   :  { %797 = vsyncadd [#allocation6], 4294964736 }
  0x3b   :  { %798 = dma.done.wait [#allocation9], 4096  }
  0x3c   :  { %799 = vsyncadd [#allocation9], 4294963200  ;;  %v809_v0 = vmov 0.0   ;;  %vm810_vm0 = vmmov 0   ;;  %v103_v1 = vld [vmem:[#allocation5 + $0x18] sm:$0xff]  ;;  %v102_v2 = vld [vmem:[#allocation5 + $0x10] sm:$0xff] }
  0x3d   :  { %548 = vmatprep.subr.mxu0 %v809_v0  ;;  %556 = vmatprep.mubr.msk.f32.mxu0 %vm810_vm0, %v809_v0  ;;  %v201_v3 = vld [vmem:[#allocation7 + $0x78] sm:$0xff]  ;;  %v101_v4 = vld [vmem:[#allocation5 + $0x8] sm:$0xff]  ;;  %v200_v5 = vld [vmem:[#allocation7 + $0x70] sm:$0xff]  ;;  %vm111_vm1 = vcmask 261120   ;;  %s811_s16 = smov [#allocation11]   ;;  %vm468_vm2 = vcmask 80896  }
  0x3e   :  { %559 = vmatprep.subr.mxu1 %v809_v0  ;;  %591 = vmatprep.mubr.msk.f32.mxu1 %vm810_vm0, %v809_v0  ;;  %v199_v6 = vld [vmem:[#allocation7 + $0x68] sm:$0xff]  ;;  %v100_v7 = vld [vmem:[#allocation5] sm:$0xff]  ;;  %v99_v8 = vld [vmem:[#allocation2] sm:$0xff]  ;;  %s476_s17 = sshll.u32 %s811_s16, 4  ;;  %s477_s17 = int_to_ptr.vmem [resolvable:$true] %s476_s17 }
  0x3f   :  { %549 = vmatpush3.msra.mxu0 %v103_v1  ;;  %560 = vmatpush3.msra.mxu1 %v201_v3  ;;  %v198_v9 = vld [vmem:[#allocation7 + $0x60] sm:$0xff]  ;;  %v197_v10 = vld [vmem:[#allocation7 + $0x58] sm:$0xff]  ;;  %v196_v11 = vld [vmem:[#allocation7 + $0x50] sm:$0xff]  ;;  %s774_s18 = scalar_lea.vmem %s477_s17, 128  ;;  %p779_p12 = scmp.lt.s32.totalorder %s477_s17, %s477_s17 }
  0x40   :  { %550 = vmatprep.subr.mxu0 %v809_v0  ;;  %561 = vmatprep.subr.mxu1 %v809_v0  ;;  %v195_v12 = vld [vmem:[#allocation7 + $0x48] sm:$0xff]  ;;  %v194_v13 = vld [vmem:[#allocation7 + $0x40] sm:$0xff]  ;;  %v193_v14 = vld [vmem:[#allocation7 + $0x38] sm:$0xff]  ;;  %p775_p11 = scmp.ne.s32.totalorder %s477_s17, %s774_s18  ;;  %p780_p13 = scmp.lt.s32.totalorder %s774_s18, %s774_s18 }
  0x41   :  { %551 = vmatpush3.msra.mxu0 %v102_v2  ;;  %562 = vmatpush3.msra.mxu1 %v200_v5  ;;  %v192_v15 = vld [vmem:[#allocation7 + $0x30] sm:$0xff]  ;;  %v191_v16 = vld [vmem:[#allocation7 + $0x28] sm:$0xff]  ;;  %v190_v17 = vld [vmem:[#allocation7 + $0x20] sm:$0xff] }
  0x42   :  { %552 = vmatprep.subr.mxu0 %v809_v0  ;;  %563 = vmatprep.subr.mxu1 %v809_v0  ;;  %v189_v18 = vld [vmem:[#allocation7 + $0x18] sm:$0xff]  ;;  %v188_v19 = vld [vmem:[#allocation7 + $0x10] sm:$0xff]  ;;  %v187_v20 = vld [vmem:[#allocation7 + $0x8] sm:$0xff]  ;;  %p781_p0 = por %p780_p13, %p779_p12 }
  0x43   :  { %553 = vmatpush3.msra.mxu0 %v101_v4  ;;  %564 = vmatpush3.msra.mxu1 %v199_v6  ;;  %v186_v21 = vld [vmem:[#allocation7] sm:$0xff]  ;;  %v295_v22 = vld [vmem:[#allocation8 + $0x78] sm:$0xff]  ;;  %v294_v23 = vld [vmem:[#allocation8 + $0x70] sm:$0xff] }
  0x44   :  { %554 = vmatprep.subr.mxu0 %v809_v0  ;;  %565 = vmatprep.subr.mxu1 %v809_v0  ;;  %v293_v24 = vld [vmem:[#allocation8 + $0x68] sm:$0xff]  ;;  %v292_v25 = vld [vmem:[#allocation8 + $0x60] sm:$0xff]  ;;  %v291_v26 = vld [vmem:[#allocation8 + $0x58] sm:$0xff]  ;;  %p782_p1 = pnand %p781_p0, %p775_p11 }
  0x45   :  { %555 = vmatpush3.msra.mxu0 %v100_v7  ;;  %566 = vmatpush3.msra.mxu1 %v198_v9  ;;  %v290_v27 = vld [vmem:[#allocation8 + $0x50] sm:$0xff]  ;;  %v289_v28 = vld [vmem:[#allocation8 + $0x48] sm:$0xff]  ;;  %v288_v29 = vld [vmem:[#allocation8 + $0x40] sm:$0xff] }
  0x46   :  { %557 = vmatmul.mubr.msk.f32.vlgmr.msra.gmra.mxu0 %vm111_vm1, %v99_v8  ;;  %567 = vmatprep.subr.mxu1 %v809_v0  ;;  %v287_v30 = vld [vmem:[#allocation8 + $0x38] sm:$0xff]  ;;  %v286_v31 = vld [vmem:[#allocation8 + $0x30] sm:$0xff]  ;;  %v285_v32 = vld [vmem:[#allocation8 + $0x28] sm:$0xff] }
  0x47   :  { %594 = vmatprep.subr.mxu0 %v809_v0  ;;  %568 = vmatpush3.msra.mxu1 %v197_v10  ;;  %v284_v33 = vld [vmem:[#allocation8 + $0x20] sm:$0xff]  ;;  %v283_v34 = vld [vmem:[#allocation8 + $0x18] sm:$0xff]  ;;  %v282_v40 = vld [vmem:[#allocation8 + $0x10] sm:$0xff] }
  0x48   :  { %626 = vmatprep.mubr.msk.f32.mxu0 %vm810_vm0, %v809_v0  ;;  %569 = vmatprep.subr.mxu1 %v809_v0  ;;  %v487_v35 = vld [vmem:[%s966_s2] ss:$0 sm:$0xff]  ;;  %v281_v41 = vld [vmem:[#allocation8 + $0x8] sm:$0xff]  ;;  %v280_v42 = vld [vmem:[#allocation8] sm:$0xff] }
  0x49   :  { %570 = vmatpush3.msra.mxu1 %v196_v11  ;;  %595 = vmatpush3.msra.mxu0 %v295_v22  ;;  %v389_v43 = vld [vmem:[#allocation10 + $0x78] sm:$0xff]  ;;  %v388_v44 = vld [vmem:[#allocation10 + $0x70] sm:$0xff]  ;;  %v387_v45 = vld [vmem:[#allocation10 + $0x68] sm:$0xff] }
  0x4a   :  { %571 = vmatprep.subr.mxu1 %v809_v0  ;;  %596 = vmatprep.subr.mxu0 %v809_v0  ;;  %v386_v46 = vld [vmem:[#allocation10 + $0x60] sm:$0xff]  ;;  %v385_v47 = vld [vmem:[#allocation10 + $0x58] sm:$0xff]  ;;  %v384_v48 = vld [vmem:[#allocation10 + $0x50] sm:$0xff] }
  0x4b   :  { %572 = vmatpush3.msra.mxu1 %v195_v12  ;;  %597 = vmatpush3.msra.mxu0 %v294_v23  ;;  %v383_v49 = vld [vmem:[#allocation10 + $0x48] sm:$0xff]  ;;  %v382_v50 = vld [vmem:[#allocation10 + $0x40] sm:$0xff]  ;;  %v381_v51 = vld [vmem:[#allocation10 + $0x38] sm:$0xff] }
  0x4c   :  { %573 = vmatprep.subr.mxu1 %v809_v0  ;;  %598 = vmatprep.subr.mxu0 %v809_v0  ;;  %v380_v52 = vld [vmem:[#allocation10 + $0x30] sm:$0xff]  ;;  %v379_v53 = vld [vmem:[#allocation10 + $0x28] sm:$0xff]  ;;  %v378_v54 = vld [vmem:[#allocation10 + $0x20] sm:$0xff] }
  0x4d   :  { %574 = vmatpush3.msra.mxu1 %v194_v13  ;;  %599 = vmatpush3.msra.mxu0 %v293_v24  ;;  %v377_v55 = vld [vmem:[#allocation10 + $0x18] sm:$0xff]  ;;  %v376_v61 = vld [vmem:[#allocation10 + $0x10] sm:$0xff]  ;;  %v375_v62 = vld [vmem:[#allocation10 + $0x8] sm:$0xff] }
  0x4e   :  { %575 = vmatprep.subr.mxu1 %v809_v0  ;;  %600 = vmatprep.subr.mxu0 %v809_v0  ;;  %v489_v56 = vld [vmem:[%s968_s4] ss:$0 sm:$0xff]  ;;  %v374_v63 = vld [vmem:[#allocation10] sm:$0xff] }
  0x4f   :  { %576 = vmatpush3.msra.mxu1 %v193_v14  ;;  %601 = vmatpush3.msra.mxu0 %v292_v25  ;;  %v490_v1 = vld [vmem:[%s970_s6] ss:$0 sm:$0xff] }
  0x50   :  { %577 = vmatprep.subr.mxu1 %v809_v0  ;;  %602 = vmatprep.subr.mxu0 %v809_v0  ;;  %v491_v6 = vld [vmem:[%s972_s8] ss:$0 sm:$0xff] }
  0x51   :  { %578 = vmatpush3.msra.mxu1 %v192_v15  ;;  %603 = vmatpush3.msra.mxu0 %v291_v26 }
  0x52   :  { %579 = vmatprep.subr.mxu1 %v809_v0  ;;  %604 = vmatprep.subr.mxu0 %v809_v0 }
  0x53   :  { %580 = vmatpush3.msra.mxu1 %v191_v16  ;;  %605 = vmatpush3.msra.mxu0 %v290_v27 }
  0x54   :  { %581 = vmatprep.subr.mxu1 %v809_v0  ;;  %606 = vmatprep.subr.mxu0 %v809_v0 }
  0x55   :  { %582 = vmatpush3.msra.mxu1 %v190_v17  ;;  %607 = vmatpush3.msra.mxu0 %v289_v28 }
  0x56   :  { %583 = vmatprep.subr.mxu1 %v809_v0  ;;  %608 = vmatprep.subr.mxu0 %v809_v0 }
  0x57   :  { %584 = vmatpush3.msra.mxu1 %v189_v18  ;;  %609 = vmatpush3.msra.mxu0 %v288_v29 }
  0x58   :  { %585 = vmatprep.subr.mxu1 %v809_v0  ;;  %610 = vmatprep.subr.mxu0 %v809_v0 }
  0x59   :  { %586 = vmatpush3.msra.mxu1 %v188_v19  ;;  %611 = vmatpush3.msra.mxu0 %v287_v30 }
  0x5a   :  { %587 = vmatprep.subr.mxu1 %v809_v0  ;;  %612 = vmatprep.subr.mxu0 %v809_v0 }
  0x5b   :  { %588 = vmatpush3.msra.mxu1 %v187_v20  ;;  %613 = vmatpush3.msra.mxu0 %v286_v31 }
  0x5c   :  { %589 = vmatprep.subr.mxu1 %v809_v0  ;;  %614 = vmatprep.subr.mxu0 %v809_v0 }
  0x5d   :  { %590 = vmatpush3.msra.mxu1 %v186_v21  ;;  %615 = vmatpush3.msra.mxu0 %v285_v32 }
  0x5e   :  { %629 = vmatprep.subr.mxu1 %v809_v0  ;;  %616 = vmatprep.subr.mxu0 %v809_v0 }
  0x5f   :  { %617 = vmatpush3.msra.mxu0 %v284_v33 }
  0x60   :  { %618 = vmatprep.subr.mxu0 %v809_v0 }
  0x61   :  { %619 = vmatpush3.msra.mxu0 %v283_v34 }
  0x62   :  { %620 = vmatprep.subr.mxu0 %v809_v0 }
  0x63   :  { %621 = vmatpush3.msra.mxu0 %v282_v40 }
  0x64   :  { %622 = vmatprep.subr.mxu0 %v809_v0 }
  0x65   :  { %623 = vmatpush3.msra.mxu0 %v281_v41 }
  0x66   :  { %624 = vmatprep.subr.mxu0 %v809_v0 }
  0x67   :  { %625 = vmatpush3.msra.mxu0 %v280_v42 }
 0x106   :  { %v181_v36 = vpop.f32.mrf.mxu0 }
 0x107   :  { %v182_v37 = vadd.f32 %v487_v35, %v181_v36 }
 0x108   :  { %v558_v38 = vpop.f32.mrf.mxu0 }
 0x109   :  { %v185_v39 = vmax.f32 %v182_v37, 0.0 }
 0x10b   :  { %592 = vmatmul.mubr.f32.vlgmr.msra.gmra.mxu1 %v185_v39 }
 0x10c   :  { %661 = vmatprep.mubr.msk.f32.mxu1 %vm810_vm0, %v809_v0  ;;  %630 = vmatpush3.msra.mxu1 %v389_v43 }
 0x10d   :  { %631 = vmatprep.subr.mxu1 %v809_v0 }
 0x10e   :  { %632 = vmatpush3.msra.mxu1 %v388_v44 }
 0x10f   :  { %633 = vmatprep.subr.mxu1 %v809_v0 }
 0x110   :  { %634 = vmatpush3.msra.mxu1 %v387_v45 }
 0x111   :  { %635 = vmatprep.subr.mxu1 %v809_v0 }
 0x112   :  { %636 = vmatpush3.msra.mxu1 %v386_v46 }
 0x113   :  { %637 = vmatprep.subr.mxu1 %v809_v0 }
 0x114   :  { %638 = vmatpush3.msra.mxu1 %v385_v47 }
 0x115   :  { %639 = vmatprep.subr.mxu1 %v809_v0 }
 0x116   :  { %640 = vmatpush3.msra.mxu1 %v384_v48 }
 0x117   :  { %641 = vmatprep.subr.mxu1 %v809_v0 }
 0x118   :  { %642 = vmatpush3.msra.mxu1 %v383_v49 }
 0x119   :  { %643 = vmatprep.subr.mxu1 %v809_v0 }
 0x11a   :  { %644 = vmatpush3.msra.mxu1 %v382_v50 }
 0x11b   :  { %645 = vmatprep.subr.mxu1 %v809_v0 }
 0x11c   :  { %646 = vmatpush3.msra.mxu1 %v381_v51 }
 0x11d   :  { %647 = vmatprep.subr.mxu1 %v809_v0 }
 0x11e   :  { %648 = vmatpush3.msra.mxu1 %v380_v52 }
 0x11f   :  { %649 = vmatprep.subr.mxu1 %v809_v0 }
 0x120   :  { %650 = vmatpush3.msra.mxu1 %v379_v53 }
 0x121   :  { %651 = vmatprep.subr.mxu1 %v809_v0 }
 0x122   :  { %652 = vmatpush3.msra.mxu1 %v378_v54 }
 0x123   :  { %653 = vmatprep.subr.mxu1 %v809_v0 }
 0x124   :  { %654 = vmatpush3.msra.mxu1 %v377_v55 }
 0x125   :  { %655 = vmatprep.subr.mxu1 %v809_v0 }
 0x126   :  { %656 = vmatpush3.msra.mxu1 %v376_v61 }
 0x127   :  { %657 = vmatprep.subr.mxu1 %v809_v0 }
 0x128   :  { %658 = vmatpush3.msra.mxu1 %v375_v62 }
 0x129   :  { %659 = vmatprep.subr.mxu1 %v809_v0 }
 0x12a   :  { %660 = vmatpush3.msra.mxu1 %v374_v63 }
 0x1cb   :  { %v275_v57 = vpop.f32.mrf.mxu1 }
 0x1cc   :  { %v276_v58 = vadd.f32 %v489_v56, %v275_v57 }
 0x1cd   :  { %v593_v59 = vpop.f32.mrf.mxu1 }
 0x1ce   :  { %v279_v60 = vmax.f32 %v276_v58, 0.0 }
 0x1d0   :  { %627 = vmatmul.mubr.f32.vlgmr.msra.gmra.mxu0 %v279_v60 }
 0x290   :  { %v369_v2 = vpop.f32.mrf.mxu0 }
 0x291   :  { %v370_v3 = vadd.f32 %v490_v1, %v369_v2 }
 0x292   :  { %v628_v4 = vpop.f32.mrf.mxu0 }
 0x293   :  { %v373_v5 = vmax.f32 %v370_v3, 0.0 }
 0x295   :  { %662 = vmatmul.mubr.f32.vlgmr.msra.gmra.mxu1 %v373_v5 }
 0x355   :  { %v463_v7 = vpop.f32.mrf.mxu1 }
 0x356   :  { %v464_v8 = vadd.f32 %v491_v6, %v463_v7 }
 0x357   :  { %v663_v0 = vpop.f32.mrf.mxu1 }
 0x358   :  { %v467_v9 = vmax.f32 %v464_v8, 0.0 }
 0x35a   :  { %469 = vst.msk [vmem:[#allocation11] sm:$0xff] %vm468_vm2, %v467_v9 }
 0x35b   :  { %785 = shalt.err (!%p782_p1)
}
 0x35c   :  { %479 = dma.vmem_to_hbm [thread:$0]  %s477_s17, 128, %s973_s9, [#allocation4]  }
 0x35d   :  { %800 = dma.done.wait [#allocation4], 128  }
 0x35e   :  { %801 = vsyncadd [#allocation4], 4294967168 }
 0x35f   :  { %483 = vsyncpa [#allocation3], 1 }
 0x360   :  { %484 = vsyncpa [#allocation6], 1 }
 0x361   :  { %485 = vsyncpa [#allocation9], 1 }
 0x362   :  { %486 = vsyncpa [#allocation4], 1 }

</bundles_post_ra>
